<compile_context>
chip_gen: v6e
topology: v6e:2x2x1
jax: 0.10.0
libtpu: 0.0.40
codegen_flags: <defaults>
</compile_context>

<pallas_src>
import functools

import jax
import jax.numpy as jnp
from jax import lax
from jax.experimental import pallas as pl
from jax.experimental.pallas import tpu as pltpu


def _soft_target_kernel(s_ref, t_ref, o_ref, *, inv_T: float, T2: float,
                        n_rows: int, tn: int, ragged: bool):
    i = pl.program_id(0)

    # (TN, C) tiles -> f32, scaled by 1/T (VPU multiply, not divide).
    s = s_ref[...].astype(jnp.float32) * inv_T
    t = t_ref[...].astype(jnp.float32) * inv_T

    # Student: stable log-softmax over the class (lane) dim.
    s_shift = s - jnp.max(s, axis=1, keepdims=True)
    z_s = jnp.sum(jnp.exp(s_shift), axis=1, keepdims=True)
    s_logsm = s_shift - jnp.log(z_s)

    # Teacher: single exp, algebraic KL (no materialized p_t / teacher log-softmax):
    #   KL_row = (1/z_t) * sum_c e_t * (t_shift - s_logsm)  -  log(z_t)
    t_shift = t - jnp.max(t, axis=1, keepdims=True)
    e_t = jnp.exp(t_shift)
    z_t = jnp.sum(e_t, axis=1, keepdims=True)
    inner = jnp.sum(e_t * (t_shift - s_logsm), axis=1, keepdims=True)     # (TN, 1)
    kl_rows = inner * pl.reciprocal(z_t, approx=False) - jnp.log(z_t)     # (TN, 1)

    scale = T2 / n_rows

    def _write(rows):
        # Lane-dense, unmasked (8,128) store; host sums one scalar per tile.
        o_ref[...] = jnp.full(o_ref.shape, jnp.sum(rows) * scale, dtype=o_ref.dtype)

    if not ragged:
        _write(kl_rows)
    else:
        last = pl.num_programs(0) - 1

        @pl.when(i != last)
        def _():
            _write(kl_rows)

        @pl.when(i == last)
        def _():
            # Mask rows past the true batch size. The mask must stay BEFORE the
            # reduction: OOB rows of the ragged last block hold unspecified data.
            row_ids = i * tn + lax.broadcasted_iota(jnp.int32, kl_rows.shape, 0)
            _write(jnp.where(row_ids < n_rows, kl_rows, 0.0))


def _vmem_limit_bytes() -> int:
    """Generation-aware scoped-VMEM limit: half of physical VMEM, capped at 64 MiB."""
    cap = 64 << 20   # safe fallback == v7x physical VMEM per TensorCore
    try:
        cap = int(pltpu.get_tpu_info().vmem_capacity_bytes)
    except Exception:
        pass
    # v5e/v6e (128 MiB phys) -> 64 MiB limit; v7x (64 MiB phys) -> 32 MiB limit.
    return int(min(max(cap // 2, 16 << 20), 64 << 20))


def soft_target_loss(out_s: jax.Array, out_t: jax.Array, T: float) -> jax.Array:
    """KD soft-target loss. Prefer bf16 logits at the call boundary where accuracy
    allows: the kernel is HBM-bound on v5e/v6e and upcasts to f32 inside VMEM."""
    assert out_s.shape == out_t.shape and out_s.ndim == 2
    n, c = out_s.shape

    # Pad the class dim to a multiple of 128 with a large negative constant so lane
    # reductions / stores run on dense vregs; padded lanes add exactly 0 to both
    # softmax partition functions.
    c_pad = (-c) % 128
    if c_pad:
        out_s = jnp.pad(out_s, ((0, 0), (0, c_pad)), constant_values=-1e30)
        out_t = jnp.pad(out_t, ((0, 0), (0, c_pad)), constant_values=-1e30)
    cp = c + c_pad

    # Batch tile from a VMEM budget that covers 2 inputs x 2 pipeline buffers AND
    # ~5 live f32 (TN, C) in-kernel temporaries.
    vmem_limit = _vmem_limit_bytes()
    in_itemsize = (jnp.dtype(out_s.dtype).itemsize
                   + jnp.dtype(out_t.dtype).itemsize)
    bytes_per_row = cp * (2 * in_itemsize + 5 * 4)
    budget = vmem_limit - (2 << 20)          # headroom for output blocks / misc
    tn = max(8, (budget // max(bytes_per_row, 1)) // 8 * 8)
    tn = min(tn, 1024)                       # >1024 rows: diminishing returns
    if n >= 16:
        # Guarantee >= 2 tiles so ("parallel",) can shard across both v7x TensorCores.
        tn = min(tn, ((pl.cdiv(n, 2) + 7) // 8) * 8)
    if tn >= n:
        tn = n                               # block == full batch extent is legal
    num_tiles = pl.cdiv(n, tn)
    ragged = (n % tn) != 0

    kernel = functools.partial(
        _soft_target_kernel,
        inv_T=1.0 / float(T),
        T2=float(T) * float(T),
        n_rows=n,
        tn=tn,
        ragged=ragged,
    )

    partials = pl.pallas_call(
        kernel,
        out_shape=jax.ShapeDtypeStruct((num_tiles, 8, 128), jnp.float32),
        grid_spec=pltpu.PrefetchScalarGridSpec(
            num_scalar_prefetch=0,
            grid=(num_tiles,),
            in_specs=[
                pl.BlockSpec((tn, cp), lambda i: (i, 0)),
                pl.BlockSpec((tn, cp), lambda i: (i, 0)),
            ],
            out_specs=pl.BlockSpec((1, 8, 128), lambda i: (i, 0, 0)),
        ),
        compiler_params=pltpu.CompilerParams(
            dimension_semantics=("parallel",),   # independent tiles -> megacore
            vmem_limit_bytes=vmem_limit,
        ),
    )(out_s, out_t)

    # Tiny host-side reduction over per-tile partials.
    return jnp.sum(partials[:, 0, 0])


def _reference(out_s, out_t, T):
    s = out_s.astype(jnp.float32) / T
    t = out_t.astype(jnp.float32) / T
    log_ps = jax.nn.log_softmax(s, axis=1)
    log_pt = jax.nn.log_softmax(t, axis=1)
    pt = jnp.exp(log_pt)
    return jnp.sum(pt * (log_pt - log_ps)) / out_s.shape[0] * T * T


if __name__ == "__main__":
    key = jax.random.PRNGKey(0)
    k0, k1, k2, k3 = jax.random.split(key, 4)

    # Case 1: small (batch, classes) logits — single tile, class dim padded 32 -> 128.
    T_a = 4.0
    N, C = 8, 32
    out_s = jax.random.normal(k0, (N, C), dtype=jnp.float32) * 2.0
    out_t = jax.random.normal(k1, (N, C), dtype=jnp.float32) * 2.0
    loss = soft_target_loss(out_s, out_t, T_a)
    jax.block_until_ready(loss)
    ref = _reference(out_s, out_t, T_a)
    assert jnp.allclose(loss, ref, atol=1e-5, rtol=1e-4), (loss, ref)

    # Case 2: exercises >=2 tiles (megacore split), ragged last tile mask, and padding.
    T_b = 2.0
    N2, C2 = 20, 100
    out_s2 = jax.random.normal(k2, (N2, C2), dtype=jnp.float32) * 1.5
    out_t2 = jax.random.normal(k3, (N2, C2), dtype=jnp.float32) * 1.5
    loss2 = soft_target_loss(out_s2, out_t2, T_b)
    jax.block_until_ready(loss2)
    ref2 = _reference(out_s2, out_t2, T_b)
    assert jnp.allclose(loss2, ref2, atol=1e-5, rtol=1e-4), (loss2, ref2)

    print("KERNEL_OK")
</pallas_src>

<mosaic_0001>
module attributes {stable_mosaic.version = 11 : i64} {
  func.func @_soft_target_kernel(%arg0: i32, %arg1: memref<8x128xf32, #tpu.memory_space<vmem>>, %arg2: memref<8x128xf32, #tpu.memory_space<vmem>>, %arg3: memref<1x8x128xf32, #tpu.memory_space<vmem>>) attributes {dimension_semantics = [#tpu.dimension_semantics<parallel>], iteration_bounds = array<i64: 1>, scalar_prefetch = 0 : i64, scratch_operands = 0 : i64, tpu.core_type = #tpu.core_type<tc>, window_params = [{transform_indices = @transform_0, window_bounds = array<i64: 8, 128>}, {transform_indices = @transform_1, window_bounds = array<i64: 8, 128>}, {transform_indices = @transform_2, window_bounds = array<i64: 1, 8, 128>}]} {
    %c0 = arith.constant 0 : index
    %c0_0 = arith.constant 0 : index
    %0 = vector.load %arg1[%c0, %c0_0] : memref<8x128xf32, #tpu.memory_space<vmem>>, vector<8x128xf32>
    %cst = arith.constant 2.500000e-01 : f32
    %1 = vector.broadcast %cst : f32 to vector<8x128xf32>
    %2 = arith.mulf %0, %1 : vector<8x128xf32>
    %c0_1 = arith.constant 0 : index
    %c0_2 = arith.constant 0 : index
    %3 = vector.load %arg2[%c0_1, %c0_2] : memref<8x128xf32, #tpu.memory_space<vmem>>, vector<8x128xf32>
    %cst_3 = arith.constant 2.500000e-01 : f32
    %4 = vector.broadcast %cst_3 : f32 to vector<8x128xf32>
    %5 = arith.mulf %3, %4 : vector<8x128xf32>
    %cst_4 = arith.constant dense<0xFF800000> : vector<8xf32>
    %6 = vector.multi_reduction <maximumf>, %2, %cst_4 [1] : vector<8x128xf32> to vector<8xf32>
    %7 = vector.shape_cast %6 : vector<8xf32> to vector<8x1xf32>
    %8 = vector.broadcast %7 : vector<8x1xf32> to vector<8x128xf32>
    %9 = arith.subf %2, %8 : vector<8x128xf32>
    %10 = math.exp %9 : vector<8x128xf32>
    %cst_5 = arith.constant dense<0.000000e+00> : vector<8xf32>
    %11 = vector.multi_reduction <add>, %10, %cst_5 [1] : vector<8x128xf32> to vector<8xf32>
    %12 = vector.shape_cast %11 : vector<8xf32> to vector<8x1xf32>
    %13 = math.log %12 : vector<8x1xf32>
    %14 = vector.broadcast %13 : vector<8x1xf32> to vector<8x128xf32>
    %15 = arith.subf %9, %14 : vector<8x128xf32>
    %cst_6 = arith.constant dense<0xFF800000> : vector<8xf32>
    %16 = vector.multi_reduction <maximumf>, %5, %cst_6 [1] : vector<8x128xf32> to vector<8xf32>
    %17 = vector.shape_cast %16 : vector<8xf32> to vector<8x1xf32>
    %18 = vector.broadcast %17 : vector<8x1xf32> to vector<8x128xf32>
    %19 = arith.subf %5, %18 : vector<8x128xf32>
    %20 = math.exp %19 : vector<8x128xf32>
    %cst_7 = arith.constant dense<0.000000e+00> : vector<8xf32>
    %21 = vector.multi_reduction <add>, %20, %cst_7 [1] : vector<8x128xf32> to vector<8xf32>
    %22 = vector.shape_cast %21 : vector<8xf32> to vector<8x1xf32>
    %23 = arith.subf %19, %15 : vector<8x128xf32>
    %24 = arith.mulf %20, %23 : vector<8x128xf32>
    %cst_8 = arith.constant dense<0.000000e+00> : vector<8xf32>
    %25 = vector.multi_reduction <add>, %24, %cst_8 [1] : vector<8x128xf32> to vector<8xf32>
    %26 = vector.shape_cast %25 : vector<8xf32> to vector<8x1xf32>
    %27 = tpu.reciprocal %22 : vector<8x1xf32> -> vector<8x1xf32>
    %28 = arith.mulf %26, %27 : vector<8x1xf32>
    %29 = math.log %22 : vector<8x1xf32>
    %30 = arith.subf %28, %29 : vector<8x1xf32>
    %31 = vector.shape_cast %30 : vector<8x1xf32> to vector<1x8x1xf32>
    %cst_9 = arith.constant dense<0.000000e+00> : vector<1xf32>
    %32 = vector.multi_reduction <add>, %31, %cst_9 [1, 2] : vector<1x8x1xf32> to vector<1xf32>
    %33 = vector.shape_cast %32 : vector<1xf32> to vector<1x1x1xf32>
    %34 = vector.extract %33[0, 0, 0] : f32 from vector<1x1x1xf32>
    %cst_10 = arith.constant 2.000000e+00 : f32
    %35 = arith.mulf %34, %cst_10 : f32
    %36 = vector.broadcast %35 : f32 to vector<1x8x128xf32>
    %c0_11 = arith.constant 0 : index
    %c0_12 = arith.constant 0 : index
    %c0_13 = arith.constant 0 : index
    %37 = vector.load %arg3[%c0_11, %c0_12, %c0_13] : memref<1x8x128xf32, #tpu.memory_space<vmem>>, vector<1x8x128xf32>
    tpu.vector_store %arg3[%c0_11, %c0_12, %c0_13], %36 {strides = array<i32>} : memref<1x8x128xf32, #tpu.memory_space<vmem>>, vector<1x8x128xf32>,
    return
  }
  func.func @transform_0(%arg0: i32) -> (i32, i32) {
    %c0_i32 = arith.constant 0 : i32
    %c0_i32_0 = arith.constant 0 : i32
    return %arg0, %c0_i32 : i32, i32
  }
  func.func @transform_1(%arg0: i32) -> (i32, i32) {
    %c0_i32 = arith.constant 0 : i32
    %c0_i32_0 = arith.constant 0 : i32
    return %arg0, %c0_i32 : i32, i32
  }
  func.func @transform_2(%arg0: i32) -> (i32, i32, i32) {
    %c0_i32 = arith.constant 0 : i32
    %c0_i32_0 = arith.constant 0 : i32
    %c0_i32_1 = arith.constant 0 : i32
    return %arg0, %c0_i32, %c0_i32_0 : i32, i32, i32
  }
}

</mosaic_0001>

<bundles_post_ra>
// kernel: tpu_custom_call.1
= control target key start
LH: loop header
LB: loop body
LE: loop exit
PB: predicated region body
PF: predicated region fallthrough
CT: control target
= control target key end

     0   :  { %7 = vsyncpa [#allocation3], 0  ;;  %s204_s0 = inlined_call_operand.hbm [shape: f32[8,128], index: 0, kind: input, shape index: {}]   ;;  %s205_s1 = inlined_call_operand.hbm [shape: f32[8,128], index: 1, kind: input, shape index: {}]   ;;  %s206_s2 = inlined_call_operand.hbm [shape: f32[1,8,128], index: 2, kind: output, shape index: {}]  }
   0x1   :  { %8 = vsyncpa [#allocation6], 0 }
   0x2   :  { %9 = vsyncpa [#allocation4], 0  ;;  %s177_s9 = smov [#allocation2]   ;;  %s178_s11 = smov [#allocation5]  }
   0x3   :  { %s16_s10 = sshll.u32 %s177_s9, 4  ;;  %s26_s12 = sshll.u32 %s178_s11, 4  ;;  %s17_s10 = int_to_ptr.vmem [resolvable:$true] %s16_s10  ;;  %s27_s12 = int_to_ptr.vmem [resolvable:$true] %s26_s12 }
   0x4   :  { %s119_s13 = scalar_lea.vmem %s17_s10, 128  ;;  %p124_p1 = scmp.lt.s32.totalorder %s17_s10, %s17_s10 }
   0x5   :  { %p120_p0 = scmp.ne.s32.totalorder %s17_s10, %s119_s13  ;;  %p125_p2 = scmp.lt.s32.totalorder %s119_s13, %s119_s13 }
   0x7   :  { %p126_p3 = por %p125_p2, %p124_p1 }
   0x9   :  { %p127_p4 = pnand %p126_p3, %p120_p0 }
   0xb   :  { %130 = shalt.err (!%p127_p4)
}
   0xc   :  { %19 = dma.hbm_to_vmem [thread:$0]  %s204_s0, 128, %s17_s10, [#allocation3]  }
   0xd   :  { %s139_s16 = scalar_lea.vmem %s27_s12, 128  ;;  %p144_p6 = scmp.lt.s32.totalorder %s27_s12, %s27_s12 }
   0xe   :  { %p140_p5 = scmp.ne.s32.totalorder %s27_s12, %s139_s16  ;;  %p145_p7 = scmp.lt.s32.totalorder %s139_s16, %s139_s16 }
  0x10   :  { %p146_p8 = por %p145_p7, %p144_p6 }
  0x12   :  { %p147_p9 = pnand %p146_p8, %p140_p5 }
  0x14   :  { %150 = shalt.err (!%p147_p9)
}
  0x15   :  { %29 = dma.hbm_to_vmem [thread:$0]  %s205_s1, 128, %s27_s12, [#allocation6]  }
  0x16   :  { %171 = dma.done.wait [#allocation3], 128  }
  0x17   :  { %172 = vsyncadd [#allocation3], 4294967168 }
  0x18   :  { %173 = dma.done.wait [#allocation6], 128  }
  0x19   :  { %174 = vsyncadd [#allocation6], 4294967168  ;;  %v36_v0 = vld [vmem:[#allocation2] sm:$0xff]  ;;  %v38_v2 = vld [vmem:[#allocation5] sm:$0xff]  ;;  %vm66_vm0 = vcmask 7168   ;;  %s179_s0 = smov [#allocation7]  }
  0x1a   :  { %v37_v1 = vmul.f32 0.25, %v36_v0  ;;  %v39_v3 = vmul.f32 0.25, %v38_v2  ;;  %s86_s1 = sshll.u32 %s179_s0, 4  ;;  %s87_s1 = int_to_ptr.vmem [resolvable:$true] %s86_s1 }
  0x1b   :  { %s151_s21 = scalar_lea.vmem %s87_s1, 128  ;;  %p156_p11 = scmp.lt.s32.totalorder %s87_s1, %s87_s1 }
  0x1c   :  { %40 = vmax.xlane.f32.xlu0 %v37_v1  ;;  %p152_p10 = scmp.ne.s32.totalorder %s87_s1, %s151_s21  ;;  %p157_p12 = scmp.lt.s32.totalorder %s151_s21, %s151_s21 }
  0x1e   :  { %p158_p13 = por %p157_p12, %p156_p11 }
  0x20   :  { %50 = vmax.xlane.f32.xlu0 %v39_v3  ;;  %p159_p0 = pnand %p158_p13, %p152_p10 }
  0xa5   :  { %v41_v4 = vpop.xlane.xlu0 %40 }
  0xa6   :  { %v42_v5 = vsub.f32 %v37_v1, %v41_v4 }
  0xa8   :  { %v43_v6 = vmul.f32 1.442695, %v42_v5 }
  0xa9   :  { %v51_v7 = vpop.xlane.xlu0 %50 }
  0xaa   :  { %101 = vpow2.f32 %v43_v6  ;;  %v52_v8 = vsub.f32 %v39_v3, %v51_v7 }
  0xac   :  { %v53_v10 = vmul.f32 1.442695, %v52_v8 }
  0xae   :  { %103 = vpow2.f32 %v53_v10 }
  0xb7   :  { %v102_v9 = vpop.eup %101 }
  0xb8   :  { %45 = vadd.xlane.f32.xlu1 %v102_v9 }
  0xbb   :  { %v104_v11 = vpop.eup %103 }
  0xbc   :  { %55 = vadd.xlane.f32.xlu1 %v104_v11 }
 0x141   :  { %v46_v12 = vpop.xlane.xlu1 %45 }
 0x142   :  { %105 = vlog2.f32 %v46_v12 }
 0x145   :  { %v56_v18 = vpop.xlane.xlu1 %55 }
 0x146   :  { %107 = vlog2.f32 %v56_v18 }
 0x147   :  { %109 = vrcp.f32 %v56_v18 }
 0x14f   :  { %v106_v13 = vpop.eup %105 }
 0x150   :  { %v48_v14 = vmul.f32 0.6931472, %v106_v13 }
 0x152   :  { %v49_v15 = vsub.f32 %v42_v5, %v48_v14 }
 0x153   :  { %v108_v19 = vpop.eup %107 }
 0x154   :  { %v57_v16 = vsub.f32 %v52_v8, %v49_v15  ;;  %v110_v20 = vpop.eup %109  ;;  %v64_v21 = vmul.f32 0.6931472, %v108_v19 }
 0x156   :  { %v58_v17 = vmul.f32 %v104_v11, %v57_v16 }
 0x158   :  { %59 = vadd.xlane.f32.xlu0 %v58_v17 }
 0x1e1   :  { %v60_v22 = vpop.xlane.xlu0 %59 }
 0x1e2   :  { %v62_v23 = vmul.f32 %v110_v20, %v60_v22 }
 0x1e4   :  { %v65_v24 = vsub.f32 %v62_v23, %v64_v21 }
 0x1e6   :  { %v67_v25 = vsel %vm66_vm0, %v65_v24, 0.0 }
 0x1e7   :  { %68 = vadd.xlane.f32.xlu1 %v67_v25 }
 0x270   :  { %v69_v26 = vpop.xlane.xlu1 %68 }
 0x271   :  { %v70_v27 = vrot.slane %v69_v26, 4 }
 0x273   :  { %v71_v28 = vadd.f32 %v70_v27, %v69_v26 }
 0x275   :  { %v72_v29 = vrot.slane %v71_v28, 2 }
 0x277   :  { %v73_v30 = vadd.f32 %v72_v29, %v71_v28 }
 0x279   :  { %v74_v31 = vrot.slane %v73_v30, 1 }
 0x27b   :  { %v75_v32 = vadd.f32 %v74_v31, %v73_v30 }
 0x27d   :  { %96 = vpush %v75_v32 }
 0x2ae   :  { %s97_s19 = spop %96 }
 0x2af   :  { %s77_s20 = smul.f32 2.0, %s97_s19 }
 0x2b1   :  { %v78_v33 = vstv %s77_s20 }
 0x2b2   :  { %79 = vst [vmem:[#allocation7] sm:$0xff] %v78_v33 }
 0x2b3   :  { %162 = shalt.err (!%p159_p0)
}
 0x2b4   :  { %89 = dma.vmem_to_hbm [thread:$0]  %s87_s1, 128, %s206_s2, [#allocation4]  }
 0x2b5   :  { %175 = dma.done.wait [#allocation4], 128  }
 0x2b6   :  { %176 = vsyncadd [#allocation4], 4294967168 }
 0x2b7   :  { %93 = vsyncpa [#allocation3], 1 }
 0x2b8   :  { %94 = vsyncpa [#allocation6], 1 }
 0x2b9   :  { %95 = vsyncpa [#allocation4], 1 }

</bundles_post_ra>
